<compile_context>
chip_gen: v7x
topology: tpu7x:2x2x1
jax: 0.10.0
libtpu: 0.0.40
codegen_flags: <defaults>
</compile_context>

<pallas_src>
import functools

import jax
import jax.numpy as jnp
from jax.experimental import pallas as pl
from jax.experimental.pallas import tpu as pltpu

EMBED_DIM = 128          # fixed by the module
BLOCK_SIZE = 256         # causal-mask buffer size in the module (mask sliced to T)
DROPOUT_P = 0.2          # nn.Dropout(0.2); eval-mode (identity) semantics here
# TODO(synk): dropout is implemented as identity (eval-mode semantics); training-mode
#             stochastic dropout of the attention weights is not reproduced here
#             (would need pltpu.prng_seed / pltpu.prng_random_bits on `p`).


def _head_kernel(x_ref, wqkv_ref, o_ref, *, head_size):
    # x_ref:    (Bt, T, C) block of batch elements
    # wqkv_ref: (C, 3H) fused projection weights, bf16
    # o_ref:    (Bt, T, H) output block
    H = head_size
    Bt, T, C = x_ref.shape

    x = x_ref[...].astype(jnp.bfloat16)                # (Bt, T, C) -> bf16 MXU operand
    w = wqkv_ref[...]                                  # (C, 3H), already bf16

    # Fused QKV projection: one MXU matmul with M = Bt*T, N = 3H.
    # (merge of (Bt, T) keeps the (8,128) tiling -> no relayout copy)
    xm = x.reshape(Bt * T, C)
    qkv = jnp.dot(xm, w, preferred_element_type=jnp.float32)      # (Bt*T, 3H) f32
    qkv = qkv.reshape(Bt, T, 3 * H)

    scale = jnp.float32(head_size ** -0.5)
    q = qkv[..., 0 * H:1 * H] * scale                  # fold scale into q (Bt*T*H mul)
    k = qkv[..., 1 * H:2 * H]
    v = qkv[..., 2 * H:3 * H]

    # Scores: contract the head dim of q and k directly (no k transpose).
    s = jax.lax.dot_general(
        q.astype(jnp.bfloat16), k.astype(jnp.bfloat16),
        dimension_numbers=(((2,), (2,)), ((0,), (0,))),
        preferred_element_type=jnp.float32)            # (Bt, T, T) f32

    # Causal mask as additive bias (finite -1e30, not -inf).
    row = jax.lax.broadcasted_iota(jnp.int32, (T, T), 0)
    col = jax.lax.broadcasted_iota(jnp.int32, (T, T), 1)
    bias = jnp.where(col <= row, jnp.float32(0.0), jnp.float32(-1e30))
    s = s + bias[None, :, :]

    # Numerically-stable softmax, all in f32 (VPU/EUP math).
    m = jnp.max(s, axis=-1, keepdims=True)
    e = jnp.exp(s - m)
    denom = jnp.sum(e, axis=-1, keepdims=True)
    p = e * pl.reciprocal(denom, approx=True)          # EUP reciprocal, not a divide

    # dropout: identity in eval mode

    out = jax.lax.dot_general(
        p.astype(jnp.bfloat16), v.astype(jnp.bfloat16),
        dimension_numbers=(((2,), (1,)), ((0,), (0,))),
        preferred_element_type=jnp.float32)            # (Bt, T, H) f32

    o_ref[...] = out.astype(o_ref.dtype)


def _pick_block_b(B, max_block=8):
    """Largest divisor of B <= max_block, but keep >= 2 grid steps when B > 1
    (v7x has 2 TensorCores; a grid of 1 idles one of them)."""
    divisors = [d for d in range(1, min(B, max_block) + 1) if B % d == 0]
    block_b = divisors[-1]
    if B > 1 and B // block_b < 2:
        for d in reversed(divisors):
            if B // d >= 2:
                block_b = d
                break
    return block_b


def head_forward(x, wq, wk, wv, *, block_b=None):
    """x: (B, T, C) float32;  wq/wk/wv: (C, H) float32.  Returns (B, T, H) in x.dtype."""
    B, T, C = x.shape
    H = wq.shape[1]
    assert C == EMBED_DIM and T <= BLOCK_SIZE

    if block_b is None:
        block_b = _pick_block_b(B)
    assert B % block_b == 0, "block_b must divide B"

    # Fused projection weight (C, 3H), bf16 for the MXU fast path.
    wqkv = jnp.concatenate([wq, wk, wv], axis=1).astype(jnp.bfloat16)

    kernel = functools.partial(_head_kernel, head_size=H)

    # Note: with the default tiny blocks this comfortably fits the scoped-VMEM
    # default; if block_b/T are grown substantially, budget VMEM and set
    # pltpu.CompilerParams(vmem_limit_bytes=...) (v7x has only 64 MiB VMEM).
    return pl.pallas_call(
        kernel,
        out_shape=jax.ShapeDtypeStruct((B, T, H), x.dtype),
        grid_spec=pltpu.PrefetchScalarGridSpec(
            num_scalar_prefetch=0,
            grid=(B // block_b,),
            in_specs=[
                pl.BlockSpec((block_b, T, C), lambda b: (b, 0, 0)),
                pl.BlockSpec((C, 3 * H), lambda b: (0, 0)),
            ],
            out_specs=pl.BlockSpec((block_b, T, H), lambda b: (b, 0, 0)),
        ),
        compiler_params=pltpu.CompilerParams(
            dimension_semantics=("parallel",)),
    )(x, wqkv)


def head_reference(x, wq, wk, wv):
    """Pure-JAX f32 reference with the PyTorch module's semantics (eval mode)."""
    H = wq.shape[1]
    q = x @ wq
    k = x @ wk
    v = x @ wv
    wei = (q @ jnp.swapaxes(k, -2, -1)) * (H ** -0.5)
    T = x.shape[1]
    mask = jnp.tril(jnp.ones((T, T), dtype=bool))
    wei = jnp.where(mask, wei, -jnp.inf)
    wei = jax.nn.softmax(wei, axis=-1)
    return wei @ v


if __name__ == "__main__":
    key = jax.random.PRNGKey(0)
    B, T, C = 2, 8, EMBED_DIM
    head_size = 32

    kx, kq, kk, kv = jax.random.split(key, 4)
    x = jax.random.normal(kx, (B, T, C), dtype=jnp.float32)
    # deterministic param init (nn.Linear-like scale 1/sqrt(C)), stored as (C, H)
    scale = 1.0 / (C ** 0.5)
    wq = jax.random.uniform(kq, (C, head_size), jnp.float32, -scale, scale)
    wk = jax.random.uniform(kk, (C, head_size), jnp.float32, -scale, scale)
    wv = jax.random.uniform(kv, (C, head_size), jnp.float32, -scale, scale)

    out = head_forward(x, wq, wk, wv)
    out = jax.block_until_ready(out)

    ref = head_reference(x, wq, wk, wv)
    assert out.shape == (B, T, head_size)
    # bf16 MXU operands + approx reciprocal -> compare with bf16-appropriate tolerance
    assert jnp.allclose(out, ref, atol=3e-2, rtol=3e-2), "mismatch vs reference"

    print("KERNEL_OK")
</pallas_src>

<mosaic_0001>
module attributes {stable_mosaic.version = 11 : i64} {
  func.func @_head_kernel(%arg0: i32, %arg1: memref<1x8x128xf32, #tpu.memory_space<vmem>>, %arg2: memref<128x96xbf16, #tpu.memory_space<vmem>>, %arg3: memref<1x8x32xf32, #tpu.memory_space<vmem>>) attributes {dimension_semantics = [#tpu.dimension_semantics<parallel>], iteration_bounds = array<i64: 2>, scalar_prefetch = 0 : i64, scratch_operands = 0 : i64, tpu.core_type = #tpu.core_type<tc>, window_params = [{transform_indices = @transform_0, window_bounds = array<i64: 1, 8, 128>}, {pipeline_mode = #tpu.pipeline_mode<synchronous>, transform_indices = @transform_1, window_bounds = array<i64: 128, 96>}, {transform_indices = @transform_2, window_bounds = array<i64: 1, 8, 32>}]} {
    %c0 = arith.constant 0 : index
    %c0_0 = arith.constant 0 : index
    %c0_1 = arith.constant 0 : index
    %0 = vector.load %arg1[%c0, %c0_0, %c0_1] : memref<1x8x128xf32, #tpu.memory_space<vmem>>, vector<1x8x128xf32>
    %1 = arith.truncf %0 : vector<1x8x128xf32> to vector<1x8x128xbf16>
    %c0_2 = arith.constant 0 : index
    %c0_3 = arith.constant 0 : index
    %2 = vector.load %arg2[%c0_2, %c0_3] : memref<128x96xbf16, #tpu.memory_space<vmem>>, vector<128x96xbf16>
    %3 = vector.shape_cast %1 : vector<1x8x128xbf16> to vector<8x128xbf16>
    %cst = arith.constant dense<0.000000e+00> : vector<8x96xf32>
    %4 = tpu.matmul %3, %2, %cst {dimension_numbers = #tpu.dot_dimension_numbers<[1], [0], [0], [1], [0, 0, 1, 1], [], []>} : vector<8x128xbf16>, vector<128x96xbf16>, vector<8x96xf32> -> vector<8x96xf32>
    %5 = vector.shape_cast %4 : vector<8x96xf32> to vector<1x8x96xf32>
    %6 = vector.extract_strided_slice %5 {offsets = [0, 0, 0], sizes = [1, 8, 32], strides = [1, 1, 1]} : vector<1x8x96xf32> to vector<1x8x32xf32>
    %cst_4 = arith.constant 0.176776692 : f32
    %7 = vector.broadcast %cst_4 : f32 to vector<1x8x32xf32>
    %8 = arith.mulf %6, %7 : vector<1x8x32xf32>
    %9 = vector.extract_strided_slice %5 {offsets = [0, 0, 32], sizes = [1, 8, 32], strides = [1, 1, 1]} : vector<1x8x96xf32> to vector<1x8x32xf32>
    %10 = vector.extract_strided_slice %5 {offsets = [0, 0, 64], sizes = [1, 8, 32], strides = [1, 1, 1]} : vector<1x8x96xf32> to vector<1x8x32xf32>
    %11 = arith.truncf %8 : vector<1x8x32xf32> to vector<1x8x32xbf16>
    %12 = arith.truncf %9 : vector<1x8x32xf32> to vector<1x8x32xbf16>
    %cst_5 = arith.constant dense<0.000000e+00> : vector<1x8x8xf32>
    %13 = tpu.matmul %11, %12, %cst_5 {dimension_numbers = #tpu.dot_dimension_numbers<[2], [2], [1], [1], [0, 0, 0, 1, 1, 1], [0], [0]>} : vector<1x8x32xbf16>, vector<1x8x32xbf16>, vector<1x8x8xf32> -> vector<1x8x8xf32>
    %14 = tpu.iota {dimensions = array<i32: 0>} : vector<8x8xi32>
    %15 = tpu.iota {dimensions = array<i32: 1>} : vector<8x8xi32>
    %16 = arith.cmpi sle, %15, %14 : vector<8x8xi32>
    %cst_6 = arith.constant 0.000000e+00 : f32
    %cst_7 = arith.constant -1.000000e+30 : f32
    %17 = vector.broadcast %cst_6 : f32 to vector<8x8xf32>
    %18 = vector.broadcast %cst_7 : f32 to vector<8x8xf32>
    %19 = arith.select %16, %17, %18 : vector<8x8xi1>, vector<8x8xf32>
    %20 = vector.shape_cast %19 : vector<8x8xf32> to vector<1x8x8xf32>
    %21 = arith.addf %13, %20 : vector<1x8x8xf32>
    %cst_8 = arith.constant dense<0xFF800000> : vector<1x8xf32>
    %22 = vector.multi_reduction <maximumf>, %21, %cst_8 [2] : vector<1x8x8xf32> to vector<1x8xf32>
    %23 = vector.shape_cast %22 : vector<1x8xf32> to vector<1x8x1xf32>
    %24 = vector.broadcast %23 : vector<1x8x1xf32> to vector<1x8x8xf32>
    %25 = arith.subf %21, %24 : vector<1x8x8xf32>
    %26 = math.exp %25 : vector<1x8x8xf32>
    %cst_9 = arith.constant dense<0.000000e+00> : vector<1x8xf32>
    %27 = vector.multi_reduction <add>, %26, %cst_9 [2] : vector<1x8x8xf32> to vector<1x8xf32>
    %28 = vector.shape_cast %27 : vector<1x8xf32> to vector<1x8x1xf32>
    %29 = tpu.reciprocal %28 {approx = true} : vector<1x8x1xf32> -> vector<1x8x1xf32>
    %30 = vector.broadcast %29 : vector<1x8x1xf32> to vector<1x8x8xf32>
    %31 = arith.mulf %26, %30 : vector<1x8x8xf32>
    %32 = arith.truncf %31 : vector<1x8x8xf32> to vector<1x8x8xbf16>
    %33 = arith.truncf %10 : vector<1x8x32xf32> to vector<1x8x32xbf16>
    %cst_10 = arith.constant dense<0.000000e+00> : vector<1x8x32xf32>
    %34 = tpu.matmul %32, %33, %cst_10 {dimension_numbers = #tpu.dot_dimension_numbers<[2], [1], [1], [2], [0, 0, 0, 1, 1, 2], [0], [0]>} : vector<1x8x8xbf16>, vector<1x8x32xbf16>, vector<1x8x32xf32> -> vector<1x8x32xf32>
    %c0_11 = arith.constant 0 : index
    %c0_12 = arith.constant 0 : index
    %c0_13 = arith.constant 0 : index
    %35 = vector.load %arg3[%c0_11, %c0_12, %c0_13] : memref<1x8x32xf32, #tpu.memory_space<vmem>>, vector<1x8x32xf32>
    tpu.vector_store %arg3[%c0_11, %c0_12, %c0_13], %34 {strides = array<i32>} : memref<1x8x32xf32, #tpu.memory_space<vmem>>, vector<1x8x32xf32>,
    return
  }
  func.func @transform_0(%arg0: i32) -> (i32, i32, i32) {
    %c0_i32 = arith.constant 0 : i32
    %c0_i32_0 = arith.constant 0 : i32
    %c0_i32_1 = arith.constant 0 : i32
    return %arg0, %c0_i32, %c0_i32_0 : i32, i32, i32
  }
  func.func @transform_1(%arg0: i32) -> (i32, i32) {
    %c0_i32 = arith.constant 0 : i32
    %c0_i32_0 = arith.constant 0 : i32
    %c0_i32_1 = arith.constant 0 : i32
    return %c0_i32, %c0_i32_0 : i32, i32
  }
  func.func @transform_2(%arg0: i32) -> (i32, i32, i32) {
    %c0_i32 = arith.constant 0 : i32
    %c0_i32_0 = arith.constant 0 : i32
    %c0_i32_1 = arith.constant 0 : i32
    return %arg0, %c0_i32, %c0_i32_0 : i32, i32, i32
  }
}

</mosaic_0001>

<bundles_post_ra>
// kernel: tpu_custom_call.1
= control target key start
LH: loop header
LB: loop body
LE: loop exit
PB: predicated region body
PF: predicated region fallthrough
CT: control target
= control target key end

     0   :  { %7 = vsyncpa [#allocation3], 0  ;;  %s780_s0 = inlined_call_operand.vmem [shape: f32[2,8,128], index: 0, kind: input, shape index: {}]   ;;  %s781_s1 = inlined_call_operand.vmem [shape: bf16[128,96], index: 1, kind: input, shape index: {}]   ;;  %s782_s2 = inlined_call_operand.hbm [shape: f32[2,8,32], index: 2, kind: output, shape index: {}]  }
   0x1   :  { %9 = vsyncpa [#allocation3 + $0x1], 0  ;;  %s647_s9 = smov 0   ;;  %s649_s10 = smov 0  }
   0x2   :  { %s651_s11 = smov 0   ;;  %s653_s12 = smov 0  }
   0x3 LB: > { %s668_s13 = sadd.s32 4294967295, %s624_s12   ;;  %s441_s14 = sadd.s32 4294967294, %s624_s12   ;;  %s624_s12 = sphi %s653_s12, %s788_s12   ;;  %s620_s11 = sphi %s651_s11, %s787_s11   ;;  %s616_s10 = sphi %s649_s10, %s786_s10   ;;  %s612_s9 = sphi %s647_s9, %s785_s9  }
   0x4   : > { %s672_s15 = sadd.s32 1, %s624_s12   ;;  %s69_s16 = sadd.s32 1, %s620_s11 }
   0x5   : > { %s66_s17 = ssub.s32 %s624_s12, %s672_s15  ;;  %p79_p0 = scmp.ne.s32.totalorder %s620_s11, %s616_s10 }
   0x6   : > { %p67_p1 = scmp.eq.s32.totalorder %s66_s17, 0  ;;  %p80_p2 = scmp.eq.s32.totalorder %s668_s13, 1 }
   0x7   : > { %p85_p3 = scmp.ne.s32.totalorder %s616_s10, %s612_s9  ;;  %p86_p4 = scmp.eq.s32.totalorder %s441_s14, 1 }
   0x8   : > { %s683_s18 = scalar_select %p67_p1, %s620_s11, %s69_s16  }
   0x9   : > { %p685_p5 = por %p80_p2, %p79_p0  ;;  %p689_p6 = por %p86_p4, %p85_p3 }
   0xa   : > { %p444_p7 = scmp.ge.s32.totalorder %s624_s12, 1  ;;  %p114_p8 = scmp.lt.s32.totalorder %s624_s12, 3 }
   0xc   : > { %p115_p9 = pnand %p444_p7, %p114_p8 }
   0xd   : > { %v550_v0 = vld [vmem:[%s781_s1] sm:$0xff] (!%p115_p9)   ;;  %v626_v1 = vmov (!%p115_p9), 0.0   ;;  %v551_v2 = vld [vmem:[%s781_s1 + $0x8] sm:$0xff] (!%p115_p9)   ;;  %vm627_vm0 = vmmov (!%p115_p9), 0   ;;  %v552_v3 = vld [vmem:[%s781_s1 + $0x10] sm:$0xff] (!%p115_p9)   ;;  %p135_p10 = scmp.lt.s32.totalorder (!%p115_p9), %s668_s13, 1  ;;  %v249_v20 = vlaneseq (!%p115_p9) }
   0xe   : > { %118 = sbr.rel (%p115_p9) target bundleno = 1140 (0x474), region = 28  ;;  %474 = vmatprep.subr.bf16.mxu0 (!%p115_p9), %v626_v1  ;;  %494 = vmatprep.subr.bf16.mxu1 (!%p115_p9), %v626_v1  ;;  %v553_v4 = vld [vmem:[%s781_s1 + $0x18] sm:$0xff] (!%p115_p9)   ;;  %v554_v5 = vld [vmem:[%s781_s1 + $0x20] sm:$0xff] (!%p115_p9)   ;;  %v555_v6 = vld [vmem:[%s781_s1 + $0x28] sm:$0xff] (!%p115_p9)   ;;  %s628_s23 = smov (!%p115_p9), 96   ;;  %vm258_vm1 = vcmask (!%p115_p9), 261120  }
   0xf   : > { %475 = vmatpush3.bf16.msra.mxu0 (!%p115_p9), %v550_v0  ;;  %490 = vmatprep.mubr.msk.bf16.mxu0 (!%p115_p9), %vm627_vm0, %v626_v1  ;;  %v556_v7 = vld [vmem:[%s781_s1 + $0x30] sm:$0xff] (!%p115_p9)   ;;  %v557_v8 = vld [vmem:[%s781_s1 + $0x38] sm:$0xff] (!%p115_p9)   ;;  %v250_v21 = vshrl.u32 (!%p115_p9), %v249_v20, 7  ;;  %v252_v22 = vand.u32 (!%p115_p9), 127, %v249_v20  ;;  %v629_v23 = vmov (!%p115_p9), -1e+30  }
  0x10   : > { %476 = vmatprep.subr.bf16.mxu0 (!%p115_p9), %v626_v1  ;;  %496 = vmatprep.mubr.msk.bf16.mxu1 (!%p115_p9), %vm627_vm0, %v626_v1  ;;  %vm305_vm3 = vcmask (!%p115_p9), 64512   ;;  %s630_s24 = smov (!%p115_p9), 64   ;;  %vm323_vm4 = vcmask (!%p115_p9), 1043456   ;;  %s132_s25 = sand.u32 (!%p115_p9), 1, %s616_s10  }
  0x11   : > { %vm253_vm2 = vcmp.le.s32.totalorder (!%p115_p9), %v252_v22, %v250_v21  ;;  %s445_s26 = sshll.u32 (!%p115_p9), %s132_s25, 3  ;;  %s458_s27 = sshll.u32 (!%p115_p9), %s668_s13, 7 }
  0x12   : > { %v254_v24 = vsel (!%p115_p9), %vm253_vm2, 0.0, %v629_v23  ;;  %s134_s28 = scalar_lea.vmem (!%p115_p9), [#allocation2], %s445_s26  ;;  %s737_s4 = scalar_lea.hbm (!%p115_p9), %s782_s2, %s458_s27 }
  0x13   : > { %477 = vmatpush3.bf16.msra.mxu0 (!%p115_p9), %v551_v2  ;;  %s382_s29 = sshll.u32 (!%p115_p9), %s134_s28, 4  ;;  %s369_s5 = scalar_lea.sflag (!%p115_p9), [#allocation3], %s132_s25  ;;  %s739_s29 = int_to_ptr.vmem [resolvable:$true] %s382_s29 }
  0x14   : > { %478 = vmatprep.subr.bf16.mxu0 (!%p115_p9), %v626_v1 }
  0x15   : > { %s136_s3 = scalar_select %p135_p10, %s668_s13, 1 }
  0x16   : > { %s631_s13 = smov [#allocation2]  }
  0x17   : > { %479 = vmatpush3.bf16.msra.mxu0 %v552_v3  ;;  %s446_s6 = sshll.u32 %s136_s3, 3  ;;  %s566_s7 = sshll.u32 %s631_s13, 4  ;;  %s567_s7 = int_to_ptr.vmem [resolvable:$false] %s566_s7 }
  0x18   : > { %480 = vmatprep.subr.bf16.mxu0 %v626_v1  ;;  %s138_s17 = scalar_lea.vmem %s780_s0, %s446_s6  ;;  %s562_s6 = scalar_lea.vmem %s739_s29, 128 }
  0x19   : > { %v140_v9 = vld [vmem:[%s138_s17] sm:$0xff]  ;;  %p563_p11 = scmp.ne.s32.totalorder %s739_s29, %s562_s6  ;;  %s568_s8 = scalar_lea.vmem %s567_s7, 256 }
  0x1a   : > { %v141_v10 = vpack.c.bf16 %v140_v9, %v140_v9  ;;  %p569_p0 = scmp.lt.s32.totalorder %s739_s29, %s567_s7  ;;  %p570_p1 = scmp.lt.s32.totalorder %s568_s8, %s562_s6 }
  0x1b   : > { %481 = vmatpush3.bf16.msra.mxu0 %v553_v4  ;;  %p564_p12 = pnand %p563_p11, %p685_p5 }
  0x1c   : > { %482 = vmatprep.subr.bf16.mxu0 %v626_v1  ;;  %p571_p2 = por %p570_p1, %p569_p0 }
  0x1d   : > { %p565_p13 = pneg %p564_p12 }
  0x1f   : > { %483 = vmatpush3.bf16.msra.mxu0 %v554_v5  ;;  %p572_p3 = pnand %p571_p2, %p565_p13 }
  0x20   : > { %484 = vmatprep.subr.bf16.mxu0 %v626_v1 }
  0x23   : > { %485 = vmatpush3.bf16.msra.mxu0 %v555_v6 }
  0x24   : > { %486 = vmatprep.subr.bf16.mxu0 %v626_v1 }
  0x27   : > { %487 = vmatpush3.bf16.msra.mxu0 %v556_v7 }
  0x28   : > { %488 = vmatprep.subr.bf16.mxu0 %v626_v1 }
  0x2b   : > { %489 = vmatpush3.bf16.msra.mxu0 %v557_v8 }
  0x2e   : > { %491 = vmatmul.mubr.bf16.vlgmr.msra.gmra.mrb[0].mxu0 %v141_v10 }
 0x101   : > { %v240_v11 = vpop.f32.mrb[0].mxu0 }
 0x102   : > { %v492_v12 = vpop.f32.mrb[1].mxu0  ;;  %v248_v13 = vpack.c.bf16 %v240_v11, %v240_v11  ;;  %v246_v18 = vmul.f32 0.17677669, %v240_v11 }
 0x103   : > { %v243_v14 = vpop.f32.mrb[2].mxu0 }
 0x104   : > { %256 = vrot.lane.b32.xlu0 %v248_v13, %s628_s23  ;;  %v493_v15 = vpop.f32.mrb[3].mxu0  ;;  %v247_v19 = vpack.c.bf16 %v246_v18, %v246_v18 }
 0x176   : > { %v257_v16 = vpop.permute.xlu0 %256 }
 0x177   : > { %v263_v17 = vsel %vm258_vm1, %v257_v16, 0 }
 0x178   : > { %495 = vmatpush3.bf16.xpose.msra.mxu1 %v263_v17 }
 0x179   : > { %500 = vmatprep.subr.bf16.mxu1 %v626_v1 }
 0x17f   : > { %497 = vmatmul.mubr.msk.bf16.vlgmr.msra.gmra.mrb[0].mxu1 %vm258_vm1, %v247_v19 }
 0x180   : > { %502 = vmatprep.mubr.msk.bf16.mxu1 %vm627_vm0, %v626_v1 }
 0x252   : > { %v299_v25 = vpop.f32.mrb[0].mxu1 }
 0x253   : > { %v300_v26 = vadd.f32 %v299_v25, %v254_v24  ;;  %v498_v27 = vpop.f32.mrb[1].mxu1 }
 0x254   : > { %v302_v28 = vpop.f32.mrb[2].mxu1 }
 0x255   : > { %v499_v29 = vpop.f32.mrb[3].mxu1  ;;  %v306_v30 = vsel %vm305_vm3, %v300_v26, -inf }
 0x256   : > { %307 = vmax.xlane.f32.xlu0 %v306_v30 }
 0x2e3   : > { %v308_v31 = vpop.xlane.xlu0 %307 }
 0x2e4   : > { %v309_v32 = vsub.f32 %v300_v26, %v308_v31 }
 0x2e6   : > { %v310_v33 = vmul.f32 1.442695, %v309_v32 }
 0x2e8   : > { %558 = vpow2.f32 %v310_v33 }
 0x2f2   : > { %v559_v34 = vpop.eup %558 }
 0x2f3   : > { %v312_v35 = vsel %vm305_vm3, %v559_v34, 0.0 }
 0x2f4   : > { %313 = vadd.xlane.f32.xlu1 %v312_v35 }
 0x305   : > { %318 = vrot.lane.b32.xlu1 %v248_v13, %s630_s24 }
 0x381   : > { %v314_v36 = vpop.xlane.xlu1 %313 }
 0x382   : > { %560 = vrcp.f32 %v314_v36 }
 0x385   : > { %v319_v37 = vpop.permute.xlu1 %318 }
 0x386   : > { %v325_v38 = vsel %vm323_vm4, %v319_v37, 0 }
 0x387   : > { %501 = vmatpush3.bf16.msra.mxu1 %v325_v38 }
 0x38c   : > { %v561_v39 = vpop.eup %560 }
 0x38d   : > { %v316_v40 = vmul.f32 %v561_v39, %v559_v34 }
 0x38f   : > { %v317_v41 = vpack.c.bf16 %v316_v40, %v316_v40 }
 0x391   : > { %503 = vmatmul.mubr.msk.bf16.vlgmr.msra.gmra.mrb[4].mxu1 %vm305_vm3, %v317_v41 }
 0x464   : > { %v361_v42 = vpop.f32.mrb[4].mxu1 }
 0x465   : > { %367 = vst.msk [vmem:[%s134_s28] sm:$0xff] %vm258_vm1, %v361_v42  ;;  %v504_v43 = vpop.f32.mrb[5].mxu1 }
 0x466   : > { %v364_v44 = vpop.f32.mrb[6].mxu1 }
 0x467   : > { %575 = shalt.err (!%p572_p3)
}
 0x468   : > { %s576_s14 = scalar_lea.hbm %s737_s4, 128  ;;  %s580_s21 = scalar_lea.hbm %s782_s2, 256 }
 0x469   : > { %p577_p4 = scmp.ne.s32.totalorder %s737_s4, %s576_s14  ;;  %p581_p9 = scmp.lt.u32.totalorder %s737_s4, %s782_s2 }
 0x46a   : > { %p582_p10 = scmp.lt.u32.totalorder %s580_s21, %s576_s14  ;;  %p584_p12 = scmp.lt.u32.totalorder %s576_s14, %s737_s4 }
 0x46b   : > { %p578_p7 = pnand %p577_p4, %p685_p5 }
 0x46c   : > { %p583_p11 = por %p582_p10, %p581_p9 }
 0x46d   : > { %p579_p8 = pneg %p578_p7 }
 0x46e   : > { %p585_p13 = por %p584_p12, %p583_p11 }
 0x470   : > { %p586_p0 = pnand %p585_p13, %p579_p8 }
 0x472   : > { %589 = shalt.err (!%p586_p0)
}
 0x473   : > { %506 = dma.vmem_to_hbm [thread:$0]  (%p685_p5), %s739_s29, 128, %s737_s4, %s369_s5   ;;  %v505_v45 = vpop.f32.mrb[7].mxu1 }
 0x474 PF: > { %p512_p1 = scmp.ge.s32.totalorder %s624_s12, 2  ;;  %s394_s24 = sand.u32 1, %s612_s9  }
 0x475   : > { %s395_s25 = scalar_lea.sflag [#allocation3], %s394_s24 }
 0x476   : > { %p509_p2 = pnand %p512_p1, %p689_p6 }
 0x478   : > { %607 = dma.done.wait (!%p509_p2), %s395_s25, 128  }
 0x479   : > { %609 = vsyncadd (!%p509_p2), %s395_s25, 4294967168  ;;  %p12_p3 = scmp.ge.s32.totalorder %s672_s15, 4   ;;  %s785_s9 = smov %s616_s10 }
 0x47a   : > { %s786_s10 = smov %s620_s11  ;;  %s787_s11 = smov %s683_s18 }
 0x47b   : > { %s788_s12 = smov %s672_s15  ;;  %14 = sbr.rel (!%p12_p3) target bundleno = 3 (0x3), region = 63 }
 0x482   :  { %400 = vsyncpa [#allocation3], 1 }
 0x483   :  { %402 = vsyncpa [#allocation3 + $0x1], 1 }

</bundles_post_ra>
